<compile_context>
chip_gen: v6e
topology: v6e:2x2x1
jax: 0.10.0
libtpu: 0.0.40
codegen_flags: <defaults>
</compile_context>

<pallas_src>
import functools

import jax
import jax.numpy as jnp
from jax.experimental import pallas as pl
from jax.experimental.pallas import tpu as pltpu

_W_CANDIDATES = (2048, 1024, 512, 256, 128)   # lane-dense widths (multiples of 128)
_TARGET_TILE_BYTES = 4 << 20                  # ~4 MiB per block
_VMEM_LIMIT_BYTES = 32 << 20                  # explicit scoped VMEM (safe on v5e/v6e/v7x)
_MIN_PALLAS_BYTES = 128 << 10                 # below this, plain XLA fusion wins


def _act_math(x, name):
    """Shared activation math (used by the kernel body and the tiny-input bypass)."""
    if name == "relu":
        return jnp.maximum(x, jnp.zeros((), x.dtype))
    if name == "leaky_relu":
        return jnp.where(x >= 0, x, x * jnp.asarray(0.2, x.dtype))
    # silu
    if x.dtype == jnp.float32:
        return x * jax.nn.sigmoid(x)
    xf = x.astype(jnp.float32)  # keep sigmoid math in f32 for sub-f32 dtypes
    return (xf * jax.nn.sigmoid(xf)).astype(x.dtype)


def _activation_kernel(x_ref, o_ref, *, name: str):
    o_ref[...] = _act_math(x_ref[...], name)


def activation(x: jnp.ndarray, name: str = "silu", *, donate: bool = False) -> jnp.ndarray:
    """Apply activation elementwise via a Pallas TPU kernel (any rank/dtype)."""
    if name not in ("silu", "relu", "leaky_relu"):
        raise ValueError(f"{name} activation is not supported.")

    total = x.size
    itemsize = jnp.dtype(x.dtype).itemsize
    nbytes = total * itemsize

    # Tiny-input bypass: kernel launch + repack overhead dwarfs the work.
    if nbytes < _MIN_PALLAS_BYTES:
        return _act_math(x, name)

    # Lane-dense, zero-copy repack: widest W (multiple of 128) dividing total.
    w = next((c for c in _W_CANDIDATES if total % c == 0), None)
    if w is None:
        # No pad/slice fallback (it would cost ~2 extra full-array HBM round
        # trips); plain XLA elementwise is already at the HBM roofline.
        return _act_math(x, name)

    rows = total // w
    x2d = x.reshape(rows, w)  # zero-copy view of a contiguous row-major array

    # Row tile: multiple of 8 sublanes, ~4 MiB per block, and (when splittable)
    # at least 2 blocks so v7x's two TensorCores both stream.
    max_tile_r = max(8, (_TARGET_TILE_BYTES // (w * itemsize)) // 8 * 8)
    if rows <= 8:
        tile_r = rows                       # single full-extent block (always legal)
    else:
        half = -(-rows // 2)                # cdiv(rows, 2)
        half = -(-half // 8) * 8            # round up to a multiple of 8 sublanes
        tile_r = min(max_tile_r, half)
    grid = (pl.cdiv(rows, tile_r),)         # trailing partial block is masked by Pallas

    kernel = functools.partial(_activation_kernel, name=name)
    out2d = pl.pallas_call(
        kernel,
        out_shape=jax.ShapeDtypeStruct((rows, w), x.dtype),
        grid=grid,
        in_specs=[pl.BlockSpec((tile_r, w), lambda i: (i, 0))],
        out_specs=pl.BlockSpec((tile_r, w), lambda i: (i, 0)),
        compiler_params=pltpu.CompilerParams(
            dimension_semantics=("parallel",),
            vmem_limit_bytes=_VMEM_LIMIT_BYTES,
        ),
        input_output_aliases=({0: 0} if donate else {}),
    )(x2d)

    return out2d.reshape(x.shape)


def _reference(x: jnp.ndarray, name: str) -> jnp.ndarray:
    return _act_math(x, name)


if __name__ == "__main__":
    key = jax.random.PRNGKey(0)
    k1, k2, k3 = jax.random.split(key, 3)

    # Shapes consistent with the Conv1d pipeline this module sits in: (N, C, L).
    # 1) Tiny case -> exercises the small-input bypass.
    x_small = jax.random.normal(k1, (2, 4, 16), dtype=jnp.float32)
    # 2) bf16 case with L a multiple of 128 -> zero-copy repack, 2 balanced tiles.
    x_bf16 = jax.random.normal(k2, (4, 32, 1024), dtype=jnp.bfloat16)
    # 3) f32 case with L NOT a multiple of 128 -> adaptive-W repack + partial last block.
    x_f32 = jax.random.normal(k3, (4, 40, 500), dtype=jnp.float32)

    ok = True
    for name in ("silu", "relu", "leaky_relu"):
        for x in (x_small, x_bf16, x_f32):
            out = activation(x, name)
            jax.block_until_ready(out)
            ref = _reference(x, name)
            tol = 1e-5 if x.dtype == jnp.float32 else 1e-2
            if out.shape != ref.shape or not jnp.allclose(
                out.astype(jnp.float32), ref.astype(jnp.float32), atol=tol, rtol=tol
            ):
                ok = False
                print(f"MISMATCH for {name} with shape {x.shape} dtype {x.dtype}")

    if ok:
        print("KERNEL_OK")
</pallas_src>

<mosaic_0001>
module attributes {stable_mosaic.version = 11 : i64} {
  func.func @_activation_kernel(%arg0: i32, %arg1: memref<32x2048xbf16, #tpu.memory_space<vmem>>, %arg2: memref<32x2048xbf16, #tpu.memory_space<vmem>>) attributes {dimension_semantics = [#tpu.dimension_semantics<parallel>], iteration_bounds = array<i64: 2>, scalar_prefetch = 0 : i64, scratch_operands = 0 : i64, tpu.core_type = #tpu.core_type<tc>, window_params = [{transform_indices = @transform_0, window_bounds = array<i64: 32, 2048>}, {transform_indices = @transform_1, window_bounds = array<i64: 32, 2048>}]} {
    %c0 = arith.constant 0 : index
    %c0_0 = arith.constant 0 : index
    %0 = vector.load %arg1[%c0, %c0_0] : memref<32x2048xbf16, #tpu.memory_space<vmem>>, vector<32x2048xbf16>
    %1 = arith.extf %0 : vector<32x2048xbf16> to vector<32x2048xf32>
    %2 = arith.negf %1 : vector<32x2048xf32>
    %3 = math.exp %2 : vector<32x2048xf32>
    %cst = arith.constant 1.000000e+00 : f32
    %4 = vector.broadcast %cst : f32 to vector<32x2048xf32>
    %5 = arith.addf %4, %3 : vector<32x2048xf32>
    %6 = arith.divf %4, %5 : vector<32x2048xf32>
    %7 = arith.mulf %1, %6 : vector<32x2048xf32>
    %8 = arith.truncf %7 : vector<32x2048xf32> to vector<32x2048xbf16>
    %c0_1 = arith.constant 0 : index
    %c0_2 = arith.constant 0 : index
    %9 = vector.load %arg2[%c0_1, %c0_2] : memref<32x2048xbf16, #tpu.memory_space<vmem>>, vector<32x2048xbf16>
    tpu.vector_store %arg2[%c0_1, %c0_2], %8 {strides = array<i32>} : memref<32x2048xbf16, #tpu.memory_space<vmem>>, vector<32x2048xbf16>,
    return
  }
  func.func @transform_0(%arg0: i32) -> (i32, i32) {
    %c0_i32 = arith.constant 0 : i32
    %c0_i32_0 = arith.constant 0 : i32
    return %arg0, %c0_i32 : i32, i32
  }
  func.func @transform_1(%arg0: i32) -> (i32, i32) {
    %c0_i32 = arith.constant 0 : i32
    %c0_i32_0 = arith.constant 0 : i32
    return %arg0, %c0_i32 : i32, i32
  }
}

</mosaic_0001>

<bundles_post_ra>
// kernel: tpu_custom_call.1
= control target key start
LH: loop header
LB: loop body
LE: loop exit
PB: predicated region body
PF: predicated region fallthrough
CT: control target
= control target key end

     0   :  { %6 = vsyncpa [#allocation3], 0  ;;  %s2169_s0 = inlined_call_operand.hbm [shape: bf16[64,2048], index: 0, kind: input, shape index: {}]   ;;  %s2170_s1 = inlined_call_operand.hbm [shape: bf16[64,2048], index: 1, kind: output, shape index: {}]  }
   0x1   :  { %8 = vsyncpa [#allocation3 + $0x1], 0 }
   0x2   :  { %9 = vsyncpa [#allocation4], 0 }
   0x3   :  { %11 = vsyncpa [#allocation4 + $0x1], 0  ;;  %s1558_s6 = smov 0   ;;  %s1560_s7 = smov 0  }
   0x4   :  { %s1562_s8 = smov 0   ;;  %s1564_s9 = smov 0  }
   0x5 LB: > { %s1579_s10 = sadd.s32 4294967295, %s1540_s9   ;;  %s994_s11 = sadd.s32 4294967294, %s1540_s9   ;;  %s1540_s9 = sphi %s1564_s9, %s2185_s9   ;;  %s1536_s8 = sphi %s1562_s8, %s2184_s8   ;;  %s1532_s7 = sphi %s1560_s7, %s2183_s7   ;;  %s1528_s6 = sphi %s1558_s6, %s2182_s6  }
   0x6   : > { %s1583_s12 = sadd.s32 1, %s1540_s9   ;;  %s24_s13 = sadd.s32 1, %s1536_s8 }
   0x7   : > { %s21_s14 = ssub.s32 %s1540_s9, %s1583_s12  ;;  %p31_p0 = scmp.ne.s32.totalorder %s1536_s8, %s1532_s7 }
   0x8   : > { %p22_p1 = scmp.eq.s32.totalorder %s21_s14, 0  ;;  %p32_p2 = scmp.eq.s32.totalorder %s1540_s9, 0 }
   0x9   : > { %p37_p3 = scmp.ne.s32.totalorder %s1532_s7, %s1528_s6  ;;  %p38_p4 = scmp.eq.s32.totalorder %s1579_s10, 0 }
   0xa   : > { %s1595_s15 = scalar_select %p22_p1, %s1536_s8, %s24_s13  }
   0xb   : > { %p1597_p5 = por %p32_p2, %p31_p0  ;;  %p1601_p6 = por %p38_p4, %p37_p3 }
   0xc   : > { %p61_p7 = scmp.eq.s32.totalorder %s1579_s10, 1  ;;  %p67_p8 = scmp.eq.s32.totalorder %s994_s11, 1 }
   0xd   : > { %s2174_s17 = scalar_select %p1601_p6, 1, 0 }
   0xe   : > { %p1154_p10 = scmp.lt.s32.totalorder %s1540_s9, 2  ;;  %p1608_p11 = por %p61_p7, %p31_p0 }
   0xf   : > { %p1612_p12 = por %p67_p8, %p37_p3  ;;  %s87_s20 = sand.u32 1, %s1536_s8  }
  0x10   : > { %s2175_s18 = scalar_select %p1608_p11, 1, 0 }
  0x11   : > { %s2176_s19 = scalar_select %p1612_p12, 1, 0 }
  0x12   : > { %s1107_s21 = sshll.u32 %s1540_s9, 12  ;;  %s997_s22 = sshll.u32 %s87_s20, 8 }
  0x13   : > { %s1621_s25 = scalar_lea.hbm %s2169_s0, %s1107_s21  ;;  %s91_s26 = scalar_lea.vmem [#allocation2], %s997_s22 }
  0x14   : > { %s99_s27 = sshll.u32 %s91_s26, 4  ;;  %p1625_p13 = pnand %p1154_p10, %p1597_p5  ;;  %s1629_s27 = int_to_ptr.vmem [resolvable:$true] %s99_s27 }
  0x15   : > { %s1631_s29 = scalar_lea.sflag [#allocation3], %s87_s20  ;;  %s1448_s30 = scalar_lea.hbm %s1621_s25, 4096 }
  0x16   : > { %p1449_p0 = scmp.ne.s32.totalorder %s1621_s25, %s1448_s30  ;;  %p1450_p1 = pneg %p1625_p13 }
  0x17   : > { %s1453_s4 = scalar_lea.hbm %s2169_s0, 8192  ;;  %p1454_p4 = scmp.lt.s32.totalorder %s1621_s25, %s2169_s0 }
  0x18   : > { %p1451_p2 = pnand %p1450_p1, %p1449_p0  ;;  %p1455_p5 = scmp.lt.s32.totalorder %s1453_s4, %s1448_s30 }
  0x1a   : > { %p1452_p3 = pneg %p1451_p2  ;;  %p1456_p7 = por %p1455_p5, %p1454_p4 }
  0x1c   : > { %p1457_p8 = pnand %p1456_p7, %p1452_p3 }
  0x1e   : > { %1460 = shalt.err (!%p1457_p8)
}
  0x1f   : > { %s1461_s13 = scalar_lea.vmem %s1629_s27, 4096  ;;  %s1542_s14 = smov [#allocation2]  }
  0x20   : > { %p1462_p10 = scmp.ne.s32.totalorder %s1629_s27, %s1461_s13  ;;  %s1466_s16 = sshll.u32 %s1542_s14, 4  ;;  %s1467_s16 = int_to_ptr.vmem [resolvable:$false] %s1466_s16 }
  0x21   : > { %s1468_s20 = scalar_lea.vmem %s1467_s16, 8192  ;;  %p1469_p2 = scmp.lt.s32.totalorder %s1629_s27, %s1467_s16 }
  0x22   : > { %p1464_p9 = pnand %p1462_p10, %p1450_p1  ;;  %p1470_p12 = scmp.lt.s32.totalorder %s1468_s20, %s1461_s13 }
  0x24   : > { %p1465_p0 = pneg %p1464_p9  ;;  %p1471_p11 = por %p1470_p12, %p1469_p2 }
  0x26   : > { %p1472_p6 = pnand %p1471_p11, %p1465_p0 }
  0x28   : > { %1475 = shalt.err (!%p1472_p6)
}
  0x29   : > { %s1543_s21 = smov 1024   ;;  %s1544_s22 = smov 64  }
  0x2a   : > { %1149 = dma.hbm_to_vmem [thread:$0]  (!%p1625_p13), %s1621_s25, 4096, %s1629_s27, %s1631_s29, %s1543_s21, %s1543_s21, %s1544_s22  }
  0x2b   : > { %p1001_p9 = scmp.ge.s32.totalorder %s1540_s9, 1  ;;  %p107_p1 = scmp.lt.s32.totalorder %s1540_s9, 3 }
  0x2d   : > { %p108_p3 = pnand %p1001_p9, %p107_p1 }
  0x2e   : > { %s1655_s23 = sand.u32 (!%p108_p3), 1, %s1532_s7   ;;  %p2178_p6 = scmp.ne.s32.totalorder (!%p108_p3), %s2174_s17, 0 }
  0x2f   : > { %111 = sbr.rel (%p108_p3) target bundleno = 217 (0xd9), region = 24  ;;  %s1002_s24 = sshll.u32 (!%p108_p3), %s1655_s23, 8 }
  0x30   : > { %s114_s26 = scalar_lea.sflag (!%p108_p3), [#allocation3], %s1655_s23  ;;  %s1661_s30 = scalar_lea.vmem (!%p108_p3), [#allocation2], %s1002_s24 }
  0x34   : > { %1519 = dma.done.wait (%p2178_p6), %s114_s26, 4096  }
  0x35   : > { %1521 = vsyncadd (%p2178_p6), %s114_s26, 4294963200  ;;  %v1668_v0 = vld [vmem:[%s1661_s30] sm:$0xff]  ;;  %v1671_v1 = vld [vmem:[%s1661_s30 + $0x8] sm:$0xff]  ;;  %s1802_s17 = scalar_lea.vmem [#allocation5], %s1002_s24  ;;  %s1141_s25 = sshll.u32 %s1579_s10, 12 }
  0x36   : > { %v1674_v2 = vld [vmem:[%s1661_s30 + $0x10] sm:$0xff]  ;;  %v170_v3 = vunpack.c.l.bf16 %v1668_v0  ;;  %v171_v4 = vunpack.c.h.bf16 %v1668_v0  ;;  %v172_v5 = vunpack.c.l.bf16 %v1671_v1  ;;  %v173_v6 = vunpack.c.h.bf16 %v1671_v1  ;;  %v1681_v7 = vld [vmem:[%s1661_s30 + $0x18] sm:$0xff]  ;;  %v1686_v10 = vld [vmem:[%s1661_s30 + $0x20] sm:$0xff]  ;;  %s921_s27 = sshll.u32 %s1802_s17, 4  ;;  %s2122_s2 = scalar_lea.hbm %s2170_s1, %s1141_s25  ;;  %s2125_s27 = int_to_ptr.vmem [resolvable:$true] %s921_s27 }
  0x37   : > { %v174_v8 = vunpack.c.l.bf16 %v1674_v2  ;;  %v175_v9 = vunpack.c.h.bf16 %v1674_v2  ;;  %v176_v14 = vunpack.c.l.bf16 %v1681_v7  ;;  %v177_v16 = vunpack.c.h.bf16 %v1681_v7  ;;  %v1699_v17 = vld [vmem:[%s1661_s30 + $0x28] sm:$0xff]  ;;  %v1708_v22 = vld [vmem:[%s1661_s30 + $0x30] sm:$0xff]  ;;  %v1717_v27 = vld [vmem:[%s1661_s30 + $0x38] sm:$0xff]  ;;  %s907_s10 = scalar_lea.sflag [#allocation4], %s1655_s23  ;;  %s1476_s3 = scalar_lea.vmem %s2125_s27, 4096 }
  0x38   : > { %v1004_v11 = vmul.f32 -1.442695, %v170_v3  ;;  %v1005_v12 = vmul.f32 -1.442695, %v171_v4  ;;  %v1006_v13 = vmul.f32 -1.442695, %v172_v5  ;;  %v178_v19 = vunpack.c.l.bf16 %v1686_v10  ;;  %p1477_p11 = scmp.ne.s32.totalorder %s2125_s27, %s1476_s3 }
  0x39   : > { %v1007_v15 = vmul.f32 -1.442695, %v173_v6  ;;  %v1008_v18 = vmul.f32 -1.442695, %v174_v8  ;;  %v1009_v20 = vmul.f32 -1.442695, %v175_v9  ;;  %v179_v21 = vunpack.c.h.bf16 %v1686_v10 }
  0x3a   : > { %1192 = vpow2.f32 %v1004_v11  ;;  %v1010_v23 = vmul.f32 -1.442695, %v176_v14  ;;  %v180_v24 = vunpack.c.l.bf16 %v1699_v17  ;;  %v1011_v25 = vmul.f32 -1.442695, %v177_v16  ;;  %v1740_v53 = vld [vmem:[%s1661_s30 + $0x40] sm:$0xff]  ;;  %v1743_v58 = vld [vmem:[%s1661_s30 + $0x48] sm:$0xff] }
  0x3b   : > { %1194 = vpow2.f32 %v1005_v12  ;;  %v181_v26 = vunpack.c.h.bf16 %v1699_v17  ;;  %v1012_v28 = vmul.f32 -1.442695, %v178_v19  ;;  %v182_v29 = vunpack.c.l.bf16 %v1708_v22  ;;  %v1748_v12 = vld [vmem:[%s1661_s30 + $0x50] sm:$0xff]  ;;  %p2179_p12 = scmp.ne.s32.totalorder %s2175_s18, 0  ;;  %s1545_s4 = smov [#allocation5]  }
  0x3c   : > { %1196 = vpow2.f32 %v1006_v13  ;;  %v1013_v30 = vmul.f32 -1.442695, %v179_v21  ;;  %v183_v31 = vunpack.c.h.bf16 %v1708_v22  ;;  %v1014_v32 = vmul.f32 -1.442695, %v180_v24  ;;  %s1480_s5 = sshll.u32 %s1545_s4, 4  ;;  %s1481_s5 = int_to_ptr.vmem [resolvable:$false] %s1480_s5 }
  0x3d   : > { %1198 = vpow2.f32 %v1007_v15  ;;  %v184_v33 = vunpack.c.l.bf16 %v1717_v27  ;;  %v1015_v34 = vmul.f32 -1.442695, %v181_v26  ;;  %v185_v35 = vunpack.c.h.bf16 %v1717_v27  ;;  %p1478_p13 = pnand %p1477_p11, %p2179_p12  ;;  %s1482_s11 = scalar_lea.vmem %s1481_s5, 8192 }
  0x3e   : > { %1200 = vpow2.f32 %v1008_v18  ;;  %v1016_v36 = vmul.f32 -1.442695, %v182_v29  ;;  %v1017_v37 = vmul.f32 -1.442695, %v183_v31  ;;  %v186_v61 = vunpack.c.l.bf16 %v1740_v53  ;;  %p1483_p5 = scmp.lt.s32.totalorder %s2125_s27, %s1481_s5  ;;  %p1484_p7 = scmp.lt.s32.totalorder %s1482_s11, %s1476_s3 }
  0x3f   : > { %1202 = vpow2.f32 %v1009_v20  ;;  %v1018_v38 = vmul.f32 -1.442695, %v184_v33  ;;  %v1019_v39 = vmul.f32 -1.442695, %v185_v35  ;;  %v187_v11 = vunpack.c.h.bf16 %v1740_v53  ;;  %p1479_p4 = pneg %p1478_p13 }
  0x40   : > { %1204 = vpow2.f32 %v1010_v23  ;;  %v188_v18 = vunpack.c.l.bf16 %v1743_v58  ;;  %p1485_p8 = por %p1484_p7, %p1483_p5 }
  0x41   : > { %1206 = vpow2.f32 %v1011_v25  ;;  %v189_v25 = vunpack.c.h.bf16 %v1743_v58 }
  0x42   : > { %1208 = vpow2.f32 %v1012_v28  ;;  %v1753_v28 = vld [vmem:[%s1661_s30 + $0x58] sm:$0xff]  ;;  %p1486_p10 = pnand %p1485_p8, %p1479_p4 }
  0x43   : > { %1210 = vpow2.f32 %v1013_v30 }
  0x44   : > { %1212 = vpow2.f32 %v1014_v32 }
  0x45   : > { %1214 = vpow2.f32 %v1015_v34  ;;  %v1020_v34 = vmul.f32 -1.442695, %v186_v61 }
  0x46   : > { %1216 = vpow2.f32 %v1016_v36  ;;  %v190_v36 = vunpack.c.l.bf16 %v1748_v12 }
  0x47   : > { %v1193_v40 = vpop.eup %1192  ;;  %1218 = vpow2.f32 %v1017_v37 }
  0x48   : > { %v1195_v41 = vpop.eup %1194  ;;  %v426_v42 = vadd.f32 1.0, %v1193_v40  ;;  %1220 = vpow2.f32 %v1018_v38  ;;  %v191_v40 = vunpack.c.h.bf16 %v1748_v12 }
  0x49   : > { %v1197_v43 = vpop.eup %1196  ;;  %v427_v44 = vadd.f32 1.0, %v1195_v41  ;;  %1222 = vpow2.f32 %v1019_v39  ;;  %v1021_v39 = vmul.f32 -1.442695, %v187_v11  ;;  %v1762_v41 = vld [vmem:[%s1661_s30 + $0x60] sm:$0xff] }
  0x4a   : > { %v1199_v45 = vpop.eup %1198  ;;  %1224 = vrcp.f32 %v426_v42  ;;  %v428_v46 = vadd.f32 1.0, %v1197_v43 }
  0x4b   : > { %v1201_v47 = vpop.eup %1200  ;;  %1226 = vrcp.f32 %v427_v44  ;;  %v429_v48 = vadd.f32 1.0, %v1199_v45  ;;  %v1022_v44 = vmul.f32 -1.442695, %v188_v18  ;;  %v192_v45 = vunpack.c.l.bf16 %v1753_v28 }
  0x4c   : > { %v1203_v49 = vpop.eup %1202  ;;  %1228 = vrcp.f32 %v428_v46  ;;  %v430_v50 = vadd.f32 1.0, %v1201_v47 }
  0x4d   : > { %v1205_v51 = vpop.eup %1204  ;;  %1230 = vrcp.f32 %v429_v48  ;;  %v431_v52 = vadd.f32 1.0, %v1203_v49  ;;  %v1023_v48 = vmul.f32 -1.442695, %v189_v25  ;;  %v193_v49 = vunpack.c.h.bf16 %v1753_v28 }
  0x4e   : > { %v1207_v54 = vpop.eup %1206  ;;  %1232 = vrcp.f32 %v430_v50  ;;  %v432_v55 = vadd.f32 1.0, %v1205_v51  ;;  %v1771_v50 = vld [vmem:[%s1661_s30 + $0x68] sm:$0xff] }
  0x4f   : > { %v1209_v56 = vpop.eup %1208  ;;  %1234 = vrcp.f32 %v431_v52  ;;  %v433_v57 = vadd.f32 1.0, %v1207_v54  ;;  %v1024_v54 = vmul.f32 -1.442695, %v190_v36 }
  0x50   : > { %v1211_v59 = vpop.eup %1210  ;;  %1236 = vrcp.f32 %v432_v55  ;;  %v434_v60 = vadd.f32 1.0, %v1209_v56  ;;  %v194_v55 = vunpack.c.l.bf16 %v1762_v41 }
  0x51   : > { %v1213_v62 = vpop.eup %1212  ;;  %1238 = vrcp.f32 %v433_v57  ;;  %v435_v63 = vadd.f32 1.0, %v1211_v59  ;;  %v1025_v59 = vmul.f32 -1.442695, %v191_v40 }
  0x52   : > { %v1215_v13 = vpop.eup %1214  ;;  %1240 = vrcp.f32 %v434_v60  ;;  %v436_v15 = vadd.f32 1.0, %v1213_v62  ;;  %v195_v60 = vunpack.c.h.bf16 %v1762_v41 }
  0x53   : > { %v1217_v20 = vpop.eup %1216  ;;  %1242 = vrcp.f32 %v435_v63  ;;  %v437_v23 = vadd.f32 1.0, %v1215_v13  ;;  %v1026_v63 = vmul.f32 -1.442695, %v192_v45  ;;  %v196_v13 = vunpack.c.l.bf16 %v1771_v50 }
  0x54   : > { %v1219_v30 = vpop.eup %1218  ;;  %1244 = vrcp.f32 %v436_v15  ;;  %v438_v32 = vadd.f32 1.0, %v1217_v20  ;;  %v1027_v20 = vmul.f32 -1.442695, %v193_v49 }
  0x55   : > { %v1221_v37 = vpop.eup %1220  ;;  %1246 = vrcp.f32 %v437_v23  ;;  %v439_v38 = vadd.f32 1.0, %v1219_v30  ;;  %v1793_v23 = vld [vmem:[%s1661_s30 + $0x70] sm:$0xff] }
  0x56   : > { %v1223_v42 = vpop.eup %1222  ;;  %1248 = vrcp.f32 %v438_v32  ;;  %v440_v43 = vadd.f32 1.0, %v1221_v37  ;;  %v1028_v32 = vmul.f32 -1.442695, %v194_v55 }
  0x57   : > { %v1225_v46 = vpop.eup %1224  ;;  %1250 = vrcp.f32 %v439_v38  ;;  %v441_v47 = vadd.f32 1.0, %v1223_v42  ;;  %v1810_v38 = vld [vmem:[%s1661_s30 + $0x78] sm:$0xff] }
  0x58   : > { %v1227_v51 = vpop.eup %1226  ;;  %v618_v52 = vmul.f32 %v1225_v46, %v170_v3  ;;  %1252 = vrcp.f32 %v440_v43  ;;  %v1030_v43 = vmul.f32 -1.442695, %v196_v13 }
  0x59   : > { %v1229_v56 = vpop.eup %1228  ;;  %v619_v57 = vmul.f32 %v1227_v51, %v171_v4  ;;  %1254 = vrcp.f32 %v441_v47  ;;  %v199_v47 = vunpack.c.h.bf16 %v1793_v23 }
  0x5a   : > { %v1231_v62 = vpop.eup %1230  ;;  %v620_v3 = vmul.f32 %v1229_v56, %v172_v5  ;;  %1256 = vpow2.f32 %v1020_v34  ;;  %v197_v34 = vunpack.c.h.bf16 %v1771_v50 }
  0x5b   : > { %v1233_v15 = vpop.eup %1232  ;;  %v1108_v0 = vpack.c.bf16 %v619_v57, %v618_v52  ;;  %v621_v4 = vmul.f32 %v1231_v62, %v173_v6  ;;  %1258 = vpow2.f32 %v1021_v39  ;;  %v200_v52 = vunpack.c.l.bf16 %v1810_v38 }
  0x5c   : > { %v1235_v5 = vpop.eup %1234  ;;  %v622_v30 = vmul.f32 %v1233_v15, %v174_v8  ;;  %1260 = vpow2.f32 %v1022_v44  ;;  %v1029_v8 = vmul.f32 -1.442695, %v195_v60  ;;  %v198_v44 = vunpack.c.l.bf16 %v1793_v23 }
  0x5d   : > { %v1237_v37 = vpop.eup %1236  ;;  %874 = vst [vmem:[%s1802_s17] sm:$0xff] %v1108_v0  ;;  %v1109_v1 = vpack.c.bf16 %v621_v4, %v620_v3  ;;  %v623_v6 = vmul.f32 %v1235_v5, %v175_v9  ;;  %1262 = vpow2.f32 %v1023_v48  ;;  %v1031_v51 = vmul.f32 -1.442695, %v197_v34 }
  0x5e   : > { %v1239_v39 = vpop.eup %1238  ;;  %v624_v42 = vmul.f32 %v1237_v37, %v176_v14  ;;  %1264 = vpow2.f32 %v1024_v54  ;;  %v1033_v10 = vmul.f32 -1.442695, %v199_v47 }
  0x5f   : > { %v1241_v46 = vpop.eup %1240  ;;  %875 = vst [vmem:[%s1802_s17 + $0x8] sm:$0xff] %v1109_v1  ;;  %v1110_v2 = vpack.c.bf16 %v623_v6, %v622_v30  ;;  %v625_v9 = vmul.f32 %v1239_v39, %v177_v16  ;;  %1266 = vpow2.f32 %v1025_v59  ;;  %v201_v16 = vunpack.c.h.bf16 %v1810_v38 }
  0x60   : > { %v1243_v48 = vpop.eup %1242  ;;  %v626_v14 = vmul.f32 %v1241_v46, %v178_v19  ;;  %1268 = vpow2.f32 %v1026_v63  ;;  %v1032_v59 = vmul.f32 -1.442695, %v198_v44 }
  0x61   : > { %v1245_v54 = vpop.eup %1244  ;;  %876 = vst [vmem:[%s1802_s17 + $0x10] sm:$0xff] %v1110_v2  ;;  %v1111_v56 = vpack.c.bf16 %v625_v9, %v624_v42  ;;  %v627_v7 = vmul.f32 %v1243_v48, %v179_v21  ;;  %1270 = vpow2.f32 %v1027_v20  ;;  %v1856_v2 = vld [vmem:[%s1661_s30 + $0x80] sm:$0xff] }
  0x62   : > { %v1247_v57 = vpop.eup %1246  ;;  %v628_v19 = vmul.f32 %v1245_v54, %v180_v24  ;;  %1272 = vpow2.f32 %v1028_v32  ;;  %v1034_v24 = vmul.f32 -1.442695, %v200_v52  ;;  %v1859_v54 = vld [vmem:[%s1661_s30 + $0x88] sm:$0xff] }
  0x63   : > { %v1249_v62 = vpop.eup %1248  ;;  %877 = vst [vmem:[%s1802_s17 + $0x18] sm:$0xff] %v1111_v56  ;;  %v1112_v3 = vpack.c.bf16 %v627_v7, %v626_v14  ;;  %v629_v63 = vmul.f32 %v1247_v57, %v181_v26  ;;  %1274 = vpow2.f32 %v1029_v8  ;;  %v1035_v26 = vmul.f32 -1.442695, %v201_v16 }
  0x64   : > { %v1251_v21 = vpop.eup %1250  ;;  %v630_v15 = vmul.f32 %v1249_v62, %v182_v29  ;;  %1276 = vpow2.f32 %v1030_v43  ;;  %v202_v57 = vunpack.c.l.bf16 %v1856_v2  ;;  %v203_v62 = vunpack.c.h.bf16 %v1856_v2 }
  0x65   : > { %v1253_v0 = vpop.eup %1252  ;;  %878 = vst [vmem:[%s1802_s17 + $0x20] sm:$0xff] %v1112_v3  ;;  %v1113_v4 = vpack.c.bf16 %v629_v63, %v628_v19  ;;  %v631_v17 = vmul.f32 %v1251_v21, %v183_v31  ;;  %1278 = vpow2.f32 %v1031_v51  ;;  %v1864_v3 = vld [vmem:[%s1661_s30 + $0x90] sm:$0xff]  ;;  %v204_v21 = vunpack.c.l.bf16 %v1859_v54 }
  0x66   : > { %v1255_v20 = vpop.eup %1254  ;;  %v632_v5 = vmul.f32 %v1253_v0, %v184_v33  ;;  %1280 = vpow2.f32 %v1032_v59  ;;  %v205_v0 = vunpack.c.h.bf16 %v1859_v54 }
  0x67   : > { %v1257_v29 = vpop.eup %1256  ;;  %879 = vst [vmem:[%s1802_s17 + $0x28] sm:$0xff] %v1113_v4  ;;  %v1114_v30 = vpack.c.bf16 %v631_v17, %v630_v15  ;;  %v633_v32 = vmul.f32 %v1255_v20, %v185_v35  ;;  %1282 = vpow2.f32 %v1033_v10  ;;  %v1869_v4 = vld [vmem:[%s1661_s30 + $0x98] sm:$0xff]  ;;  %v1036_v20 = vmul.f32 -1.442695, %v202_v57 }
  0x68   : > { %v1259_v22 = vpop.eup %1258  ;;  %v442_v37 = vadd.f32 1.0, %v1257_v29  ;;  %1284 = vpow2.f32 %v1034_v24 }
  0x69   : > { %v1261_v31 = vpop.eup %1260  ;;  %880 = vst [vmem:[%s1802_s17 + $0x30] sm:$0xff] %v1114_v30  ;;  %v1115_v1 = vpack.c.bf16 %v633_v32, %v632_v5  ;;  %v443_v6 = vadd.f32 1.0, %v1259_v22  ;;  %1286 = vpow2.f32 %v1035_v26  ;;  %v206_v5 = vunpack.c.l.bf16 %v1864_v3 }
  0x6a   : > { %v1263_v8 = vpop.eup %1262  ;;  %1288 = vrcp.f32 %v442_v37  ;;  %v444_v33 = vadd.f32 1.0, %v1261_v31  ;;  %v1037_v32 = vmul.f32 -1.442695, %v203_v62  ;;  %v207_v22 = vunpack.c.h.bf16 %v1864_v3  ;;  %v1878_v37 = vld [vmem:[%s1661_s30 + $0xa0] sm:$0xff] }
  0x6b   : > { %v1265_v39 = vpop.eup %1264  ;;  %881 = vst [vmem:[%s1802_s17 + $0x38] sm:$0xff] %v1115_v1  ;;  %1290 = vrcp.f32 %v443_v6  ;;  %v445_v42 = vadd.f32 1.0, %v1263_v8  ;;  %v1038_v6 = vmul.f32 -1.442695, %v204_v21  ;;  %v208_v8 = vunpack.c.l.bf16 %v1869_v4 }
  0x6c   : > { %v1267_v27 = vpop.eup %1266  ;;  %1292 = vrcp.f32 %v444_v33  ;;  %v446_v35 = vadd.f32 1.0, %v1265_v39 }
  0x6d   : > { %v1269_v43 = vpop.eup %1268  ;;  %1294 = vrcp.f32 %v445_v42  ;;  %v447_v46 = vadd.f32 1.0, %v1267_v27  ;;  %v1039_v42 = vmul.f32 -1.442695, %v205_v0  ;;  %v209_v27 = vunpack.c.h.bf16 %v1869_v4 }
  0x6e   : > { %v1271_v9 = vpop.eup %1270  ;;  %1296 = vrcp.f32 %v446_v35  ;;  %v448_v48 = vadd.f32 1.0, %v1269_v43  ;;  %v1887_v35 = vld [vmem:[%s1661_s30 + $0xa8] sm:$0xff] }
  0x6f   : > { %v1273_v14 = vpop.eup %1272  ;;  %1298 = vrcp.f32 %v447_v46  ;;  %v449_v51 = vadd.f32 1.0, %v1271_v9  ;;  %v1040_v9 = vmul.f32 -1.442695, %v206_v5 }
  0x70   : > { %v1275_v56 = vpop.eup %1274  ;;  %1300 = vrcp.f32 %v448_v48  ;;  %v450_v7 = vadd.f32 1.0, %v1273_v14  ;;  %v210_v48 = vunpack.c.l.bf16 %v1878_v37 }
  0x71   : > { %v1277_v19 = vpop.eup %1276  ;;  %1302 = vrcp.f32 %v449_v51  ;;  %v451_v59 = vadd.f32 1.0, %v1275_v56  ;;  %v1041_v56 = vmul.f32 -1.442695, %v207_v22 }
  0x72   : > { %v1279_v63 = vpop.eup %1278  ;;  %1304 = vrcp.f32 %v450_v7  ;;  %v452_v10 = vadd.f32 1.0, %v1277_v19  ;;  %v211_v7 = vunpack.c.h.bf16 %v1878_v37 }
  0x73   : > { %v1281_v15 = vpop.eup %1280  ;;  %1306 = vrcp.f32 %v451_v59  ;;  %v453_v24 = vadd.f32 1.0, %v1279_v63  ;;  %v1042_v59 = vmul.f32 -1.442695, %v208_v8  ;;  %v212_v63 = vunpack.c.l.bf16 %v1887_v35 }
  0x74   : > { %v1283_v17 = vpop.eup %1282  ;;  %1308 = vrcp.f32 %v452_v10  ;;  %v454_v26 = vadd.f32 1.0, %v1281_v15  ;;  %v1043_v15 = vmul.f32 -1.442695, %v209_v27 }
  0x75   : > { %v1285_v29 = vpop.eup %1284  ;;  %1310 = vrcp.f32 %v453_v24  ;;  %v455_v30 = vadd.f32 1.0, %v1283_v17  ;;  %v1909_v24 = vld [vmem:[%s1661_s30 + $0xb0] sm:$0xff] }
  0x76   : > { %v1287_v31 = vpop.eup %1286  ;;  %1312 = vrcp.f32 %v454_v26  ;;  %v456_v1 = vadd.f32 1.0, %v1285_v29  ;;  %v1044_v26 = vmul.f32 -1.442695, %v210_v48 }
  0x77   : > { %v1289_v33 = vpop.eup %1288  ;;  %1314 = vrcp.f32 %v455_v30  ;;  %v457_v39 = vadd.f32 1.0, %v1287_v31  ;;  %v1045_v30 = vmul.f32 -1.442695, %v211_v7 }
  0x78   : > { %v1291_v43 = vpop.eup %1290  ;;  %v634_v46 = vmul.f32 %v1289_v33, %v186_v61  ;;  %1316 = vrcp.f32 %v456_v1  ;;  %v1046_v1 = vmul.f32 -1.442695, %v212_v63 }
  0x79   : > { %v1293_v14 = vpop.eup %1292  ;;  %v635_v51 = vmul.f32 %v1291_v43, %v187_v11  ;;  %1318 = vrcp.f32 %v457_v39  ;;  %v215_v39 = vunpack.c.h.bf16 %v1909_v24 }
  0x7a   : > { %v1295_v19 = vpop.eup %1294  ;;  %v636_v61 = vmul.f32 %v1293_v14, %v188_v18  ;;  %1320 = vpow2.f32 %v1036_v20  ;;  %v213_v20 = vunpack.c.h.bf16 %v1887_v35 }
  0x7b   : > { %v1297_v10 = vpop.eup %1296  ;;  %v1116_v53 = vpack.c.bf16 %v635_v51, %v634_v46  ;;  %v637_v11 = vmul.f32 %v1295_v19, %v189_v25  ;;  %1322 = vpow2.f32 %v1037_v32  ;;  %v1922_v32 = vld [vmem:[%s1661_s30 + $0xb8] sm:$0xff]  ;;  %v1049_v41 = vmul.f32 -1.442695, %v215_v39 }
  0x7c   : > { %v1299_v18 = vpop.eup %1298  ;;  %v638_v17 = vmul.f32 %v1297_v10, %v190_v36  ;;  %1324 = vpow2.f32 %v1038_v6  ;;  %v214_v6 = vunpack.c.l.bf16 %v1909_v24  ;;  %v1047_v43 = vmul.f32 -1.442695, %v213_v20 }
  0x7d   : > { %v1301_v58 = vpop.eup %1300  ;;  %882 = vst [vmem:[%s1802_s17 + $0x40] sm:$0xff] %v1116_v53  ;;  %v1117_v25 = vpack.c.bf16 %v637_v11, %v636_v61  ;;  %v639_v29 = vmul.f32 %v1299_v18, %v191_v40  ;;  %1326 = vpow2.f32 %v1039_v42  ;;  %v216_v46 = vunpack.c.l.bf16 %v1922_v32 }
  0x7e   : > { %v1303_v36 = vpop.eup %1302  ;;  %v640_v31 = vmul.f32 %v1301_v58, %v192_v45  ;;  %1328 = vpow2.f32 %v1040_v9 }
  0x7f   : > { %v1305_v33 = vpop.eup %1304  ;;  %883 = vst [vmem:[%s1802_s17 + $0x48] sm:$0xff] %v1117_v25  ;;  %v1118_v12 = vpack.c.bf16 %v639_v29, %v638_v17  ;;  %v641_v40 = vmul.f32 %v1303_v36, %v193_v49  ;;  %1330 = vpow2.f32 %v1041_v56  ;;  %v217_v49 = vunpack.c.h.bf16 %v1922_v32 }
  0x80   : > { %v1307_v42 = vpop.eup %1306  ;;  %v642_v45 = vmul.f32 %v1305_v33, %v194_v55  ;;  %1332 = vpow2.f32 %v1042_v59  ;;  %v1048_v56 = vmul.f32 -1.442695, %v214_v6 }
  0x81   : > { %v1309_v9 = vpop.eup %1308  ;;  %884 = vst [vmem:[%s1802_s17 + $0x50] sm:$0xff] %v1118_v12  ;;  %v1119_v14 = vpack.c.bf16 %v641_v40, %v640_v31  ;;  %v643_v28 = vmul.f32 %v1307_v42, %v195_v60  ;;  %1334 = vpow2.f32 %v1043_v15  ;;  %v1968_v12 = vld [vmem:[%s1661_s30 + $0xc0] sm:$0xff] }
  0x82   : > { %v1311_v51 = vpop.eup %1310  ;;  %v644_v55 = vmul.f32 %v1309_v9, %v196_v13  ;;  %1336 = vpow2.f32 %v1044_v26  ;;  %v1050_v13 = vmul.f32 -1.442695, %v216_v46  ;;  %v1971_v9 = vld [vmem:[%s1661_s30 + $0xc8] sm:$0xff] }
  0x83   : > { %v1313_v19 = vpop.eup %1312  ;;  %885 = vst [vmem:[%s1802_s17 + $0x58] sm:$0xff] %v1119_v14  ;;  %v1120_v61 = vpack.c.bf16 %v643_v28, %v642_v45  ;;  %v645_v59 = vmul.f32 %v1311_v51, %v197_v34  ;;  %1338 = vpow2.f32 %v1045_v30  ;;  %v1051_v34 = vmul.f32 -1.442695, %v217_v49 }
  0x84   : > { %v1315_v60 = vpop.eup %1314  ;;  %v646_v10 = vmul.f32 %v1313_v19, %v198_v44  ;;  %1340 = vpow2.f32 %v1046_v1  ;;  %v218_v51 = vunpack.c.l.bf16 %v1968_v12  ;;  %v219_v19 = vunpack.c.h.bf16 %v1968_v12 }
  0x85   : > { %v1317_v53 = vpop.eup %1316  ;;  %886 = vst [vmem:[%s1802_s17 + $0x60] sm:$0xff] %v1120_v61  ;;  %v1121_v11 = vpack.c.bf16 %v645_v59, %v644_v55  ;;  %v647_v50 = vmul.f32 %v1315_v60, %v199_v47  ;;  %1342 = vpow2.f32 %v1047_v43  ;;  %v1976_v61 = vld [vmem:[%s1661_s30 + $0xd0] sm:$0xff]  ;;  %v220_v60 = vunpack.c.l.bf16 %v1971_v9 }
  0x86   : > { %v1319_v15 = vpop.eup %1318  ;;  %v648_v18 = vmul.f32 %v1317_v53, %v200_v52  ;;  %1344 = vpow2.f32 %v1048_v56  ;;  %v221_v53 = vunpack.c.h.bf16 %v1971_v9 }
  0x87   : > { %v1321_v44 = vpop.eup %1320  ;;  %887 = vst [vmem:[%s1802_s17 + $0x68] sm:$0xff] %v1121_v11  ;;  %v1122_v17 = vpack.c.bf16 %v647_v50, %v646_v10  ;;  %v649_v26 = vmul.f32 %v1319_v15, %v201_v16  ;;  %1346 = vpow2.f32 %v1049_v41  ;;  %v1981_v11 = vld [vmem:[%s1661_s30 + $0xd8] sm:$0xff]  ;;  %v1052_v15 = vmul.f32 -1.442695, %v218_v51 }
  0x88   : > { %v1323_v23 = vpop.eup %1322  ;;  %v458_v58 = vadd.f32 1.0, %v1321_v44  ;;  %1348 = vpow2.f32 %v1050_v13 }
  0x89   : > { %v1325_v47 = vpop.eup %1324  ;;  %888 = vst [vmem:[%s1802_s17 + $0x70] sm:$0xff] %v1122_v17  ;;  %v1123_v25 = vpack.c.bf16 %v649_v26, %v648_v18  ;;  %v459_v29 = vadd.f32 1.0, %v1323_v23  ;;  %1350 = vpow2.f32 %v1051_v34  ;;  %v222_v18 = vunpack.c.l.bf16 %v1976_v61 }
  0x8a   : > { %v1327_v30 = vpop.eup %1326  ;;  %1352 = vrcp.f32 %v458_v58  ;;  %v460_v52 = vadd.f32 1.0, %v1325_v47  ;;  %v1053_v26 = vmul.f32 -1.442695, %v219_v19  ;;  %v223_v23 = vunpack.c.h.bf16 %v1976_v61  ;;  %v1990_v58 = vld [vmem:[%s1661_s30 + $0xe0] sm:$0xff] }
  0x8b   : > { %v1329_v36 = vpop.eup %1328  ;;  %889 = vst [vmem:[%s1802_s17 + $0x78] sm:$0xff] %v1123_v25  ;;  %1354 = vrcp.f32 %v459_v29  ;;  %v461_v31 = vadd.f32 1.0, %v1327_v30  ;;  %v1054_v29 = vmul.f32 -1.442695, %v220_v60  ;;  %v224_v30 = vunpack.c.l.bf16 %v1981_v11 }
  0x8c   : > { %v1331_v38 = vpop.eup %1330  ;;  %1356 = vrcp.f32 %v460_v52  ;;  %v462_v16 = vadd.f32 1.0, %v1329_v36 }
  0x8d   : > { %v1333_v1 = vpop.eup %1332  ;;  %1358 = vrcp.f32 %v461_v31  ;;  %v463_v33 = vadd.f32 1.0, %v1331_v38  ;;  %v1055_v31 = vmul.f32 -1.442695, %v221_v53  ;;  %v225_v38 = vunpack.c.h.bf16 %v1981_v11 }
  0x8e   : > { %v1335_v40 = vpop.eup %1334  ;;  %1360 = vrcp.f32 %v462_v16  ;;  %v464_v42 = vadd.f32 1.0, %v1333_v1  ;;  %v1999_v16 = vld [vmem:[%s1661_s30 + $0xe8] sm:$0xff] }
  0x8f   : > { %v1337_v45 = vpop.eup %1336  ;;  %1362 = vrcp.f32 %v463_v33  ;;  %v465_v43 = vadd.f32 1.0, %v1335_v40  ;;  %v1056_v40 = vmul.f32 -1.442695, %v222_v18 }
  0x90   : > { %v1339_v14 = vpop.eup %1338  ;;  %1364 = vrcp.f32 %v464_v42  ;;  %v466_v28 = vadd.f32 1.0, %v1337_v45  ;;  %v226_v42 = vunpack.c.l.bf16 %v1990_v58 }
  0x91   : > { %v1341_v55 = vpop.eup %1340  ;;  %1366 = vrcp.f32 %v465_v43  ;;  %v467_v56 = vadd.f32 1.0, %v1339_v14  ;;  %v1057_v14 = vmul.f32 -1.442695, %v223_v23 }
  0x92   : > { %v1343_v59 = vpop.eup %1342  ;;  %1368 = vrcp.f32 %v466_v28  ;;  %v468_v41 = vadd.f32 1.0, %v1341_v55  ;;  %v227_v28 = vunpack.c.h.bf16 %v1990_v58 }
  0x93   : > { %v1345_v10 = vpop.eup %1344  ;;  %1370 = vrcp.f32 %v467_v56  ;;  %v469_v13 = vadd.f32 1.0, %v1343_v59  ;;  %v1058_v56 = vmul.f32 -1.442695, %v224_v30  ;;  %v228_v59 = vunpack.c.l.bf16 %v1999_v16 }
  0x94   : > { %v1347_v50 = vpop.eup %1346  ;;  %1372 = vrcp.f32 %v468_v41  ;;  %v470_v34 = vadd.f32 1.0, %v1345_v10  ;;  %v1059_v10 = vmul.f32 -1.442695, %v225_v38 }
  0x95   : > { %v1349_v44 = vpop.eup %1348  ;;  %1374 = vrcp.f32 %v469_v13  ;;  %v471_v17 = vadd.f32 1.0, %v1347_v50  ;;  %v2021_v13 = vld [vmem:[%s1661_s30 + $0xf0] sm:$0xff] }
  0x96   : > { %v1351_v47 = vpop.eup %1350  ;;  %1376 = vrcp.f32 %v470_v34  ;;  %v472_v25 = vadd.f32 1.0, %v1349_v44  ;;  %v1060_v34 = vmul.f32 -1.442695, %v226_v42 }
  0x97   : > { %v1353_v52 = vpop.eup %1352  ;;  %1378 = vrcp.f32 %v471_v17  ;;  %v473_v36 = vadd.f32 1.0, %v1351_v47  ;;  %v1061_v17 = vmul.f32 -1.442695, %v227_v28 }
  0x98   : > { %v1355_v1 = vpop.eup %1354  ;;  %v650_v33 = vmul.f32 %v1353_v52, %v202_v57  ;;  %1380 = vrcp.f32 %v472_v25  ;;  %v1062_v25 = vmul.f32 -1.442695, %v228_v59 }
  0x99   : > { %v1357_v45 = vpop.eup %1356  ;;  %v651_v43 = vmul.f32 %v1355_v1, %v203_v62  ;;  %1382 = vrcp.f32 %v473_v36  ;;  %v231_v36 = vunpack.c.h.bf16 %v2021_v13 }
  0x9a   : > { %v1359_v55 = vpop.eup %1358  ;;  %v652_v57 = vmul.f32 %v1357_v45, %v204_v21  ;;  %1384 = vpow2.f32 %v1052_v15  ;;  %v229_v15 = vunpack.c.h.bf16 %v1999_v16 }
  0x9b   : > { %v1361_v41 = vpop.eup %1360  ;;  %v1124_v2 = vpack.c.bf16 %v651_v43, %v650_v33  ;;  %v653_v62 = vmul.f32 %v1359_v55, %v205_v0  ;;  %1386 = vpow2.f32 %v1053_v26  ;;  %v2034_v26 = vld [vmem:[%s1661_s30 + $0xf8] sm:$0xff]  ;;  %v1065_v37 = vmul.f32 -1.442695, %v231_v36 }
  0x9c   : > { %v1363_v21 = vpop.eup %1362  ;;  %v654_v50 = vmul.f32 %v1361_v41, %v206_v5  ;;  %1388 = vpow2.f32 %v1054_v29  ;;  %v230_v29 = vunpack.c.l.bf16 %v2021_v13  ;;  %v1063_v1 = vmul.f32 -1.442695, %v229_v15 }
  0x9d   : > { %v1365_v54 = vpop.eup %1364  ;;  %890 = vst [vmem:[%s1802_s17 + $0x80] sm:$0xff] %v1124_v2  ;;  %v1125_v0 = vpack.c.bf16 %v653_v62, %v652_v57  ;;  %v655_v44 = vmul.f32 %v1363_v21, %v207_v22  ;;  %1390 = vpow2.f32 %v1055_v31  ;;  %v232_v33 = vunpack.c.l.bf16 %v2034_v26 }
  0x9e   : > { %v1367_v5 = vpop.eup %1366  ;;  %v656_v47 = vmul.f32 %v1365_v54, %v208_v8  ;;  %1392 = vpow2.f32 %v1056_v40 }
  0x9f   : > { %v1369_v52 = vpop.eup %1368  ;;  %891 = vst [vmem:[%s1802_s17 + $0x88] sm:$0xff] %v1125_v0  ;;  %v1126_v3 = vpack.c.bf16 %v655_v44, %v654_v50  ;;  %v657_v22 = vmul.f32 %v1367_v5, %v209_v27  ;;  %1394 = vpow2.f32 %v1057_v14  ;;  %v233_v27 = vunpack.c.h.bf16 %v2034_v26 }
  0xa0   : > { %v1371_v31 = vpop.eup %1370  ;;  %v658_v8 = vmul.f32 %v1369_v52, %v210_v48  ;;  %1396 = vpow2.f32 %v1058_v56  ;;  %v1064_v14 = vmul.f32 -1.442695, %v230_v29 }
  0xa1   : > { %v1373_v40 = vpop.eup %1372  ;;  %892 = vst [vmem:[%s1802_s17 + $0x90] sm:$0xff] %v1126_v3  ;;  %v1127_v45 = vpack.c.bf16 %v657_v22, %v656_v47  ;;  %v659_v4 = vmul.f32 %v1371_v31, %v211_v7  ;;  %1398 = vpow2.f32 %v1059_v10 }
  0xa2   : > { %v1375_v43 = vpop.eup %1374  ;;  %v660_v48 = vmul.f32 %v1373_v40, %v212_v63  ;;  %1400 = vpow2.f32 %v1060_v34  ;;  %v1066_v63 = vmul.f32 -1.442695, %v232_v33 }
  0xa3   : > { %v1377_v55 = vpop.eup %1376  ;;  %893 = vst [vmem:[%s1802_s17 + $0x98] sm:$0xff] %v1127_v45  ;;  %v1128_v57 = vpack.c.bf16 %v659_v4, %v658_v8  ;;  %v661_v56 = vmul.f32 %v1375_v43, %v213_v20  ;;  %1402 = vpow2.f32 %v1061_v17  ;;  %v1067_v20 = vmul.f32 -1.442695, %v233_v27 }
  0xa4   : > { %v1379_v7 = vpop.eup %1378  ;;  %v662_v41 = vmul.f32 %v1377_v55, %v214_v6  ;;  %1404 = vpow2.f32 %v1062_v25 }
  0xa5   : > { %v1381_v2 = vpop.eup %1380  ;;  %894 = vst [vmem:[%s1802_s17 + $0xa0] sm:$0xff] %v1128_v57  ;;  %v1129_v62 = vpack.c.bf16 %v661_v56, %v660_v48  ;;  %v663_v35 = vmul.f32 %v1379_v7, %v215_v39  ;;  %1406 = vpow2.f32 %v1063_v1 }
  0xa6   : > { %v1383_v10 = vpop.eup %1382  ;;  %v664_v21 = vmul.f32 %v1381_v2, %v216_v46  ;;  %1408 = vpow2.f32 %v1064_v14 }
  0xa7   : > { %v1385_v6 = vpop.eup %1384  ;;  %895 = vst [vmem:[%s1802_s17 + $0xa8] sm:$0xff] %v1129_v62  ;;  %v1130_v50 = vpack.c.bf16 %v663_v35, %v662_v41  ;;  %v665_v34 = vmul.f32 %v1383_v10, %v217_v49  ;;  %1410 = vpow2.f32 %v1065_v37 }
  0xa8   : > { %v1387_v24 = vpop.eup %1386  ;;  %v474_v54 = vadd.f32 1.0, %v1385_v6  ;;  %1412 = vpow2.f32 %v1066_v63 }
  0xa9   : > { %v1389_v39 = vpop.eup %1388  ;;  %896 = vst [vmem:[%s1802_s17 + $0xb0] sm:$0xff] %v1130_v50  ;;  %v1131_v0 = vpack.c.bf16 %v665_v34, %v664_v21  ;;  %v475_v44 = vadd.f32 1.0, %v1387_v24  ;;  %1414 = vpow2.f32 %v1067_v20 }
  0xaa   : > { %v1391_v17 = vpop.eup %1390  ;;  %1416 = vrcp.f32 %v474_v54  ;;  %v476_v46 = vadd.f32 1.0, %v1389_v39 }
  0xab   : > { %v1393_v5 = vpop.eup %1392  ;;  %897 = vst [vmem:[%s1802_s17 + $0xb8] sm:$0xff] %v1131_v0  ;;  %1418 = vrcp.f32 %v475_v44  ;;  %v477_v47 = vadd.f32 1.0, %v1391_v17 }
  0xac   : > { %v1395_v25 = vpop.eup %1394  ;;  %1420 = vrcp.f32 %v476_v46  ;;  %v478_v32 = vadd.f32 1.0, %v1393_v5 }
  0xad   : > { %v1397_v49 = vpop.eup %1396  ;;  %1422 = vrcp.f32 %v477_v47  ;;  %v479_v52 = vadd.f32 1.0, %v1395_v25 }
  0xae   : > { %v1399_v3 = vpop.eup %1398  ;;  %1424 = vrcp.f32 %v478_v32  ;;  %v480_v22 = vadd.f32 1.0, %v1397_v49 }
  0xaf   : > { %v1401_v31 = vpop.eup %1400  ;;  %1426 = vrcp.f32 %v479_v52  ;;  %v481_v8 = vadd.f32 1.0, %v1399_v3 }
  0xb0   : > { %v1403_v1 = vpop.eup %1402  ;;  %1428 = vrcp.f32 %v480_v22  ;;  %v482_v40 = vadd.f32 1.0, %v1401_v31 }
  0xb1   : > { %v1405_v45 = vpop.eup %1404  ;;  %1430 = vrcp.f32 %v481_v8  ;;  %v483_v4 = vadd.f32 1.0, %v1403_v1 }
  0xb2   : > { %v1407_v43 = vpop.eup %1406  ;;  %1432 = vrcp.f32 %v482_v40  ;;  %v484_v48 = vadd.f32 1.0, %v1405_v45 }
  0xb3   : > { %v1409_v14 = vpop.eup %1408  ;;  %1434 = vrcp.f32 %v483_v4  ;;  %v485_v55 = vadd.f32 1.0, %v1407_v43 }
  0xb4   : > { %v1411_v57 = vpop.eup %1410  ;;  %1436 = vrcp.f32 %v484_v48  ;;  %v486_v56 = vadd.f32 1.0, %v1409_v14 }
  0xb5   : > { %v1413_v37 = vpop.eup %1412  ;;  %1438 = vrcp.f32 %v485_v55  ;;  %v487_v7 = vadd.f32 1.0, %v1411_v57 }
  0xb6   : > { %v1415_v41 = vpop.eup %1414  ;;  %1440 = vrcp.f32 %v486_v56  ;;  %v488_v63 = vadd.f32 1.0, %v1413_v37 }
  0xb7   : > { %v1417_v2 = vpop.eup %1416  ;;  %1442 = vrcp.f32 %v487_v7  ;;  %v489_v62 = vadd.f32 1.0, %v1415_v41 }
  0xb8   : > { %v1419_v35 = vpop.eup %1418  ;;  %v666_v20 = vmul.f32 %v1417_v2, %v218_v51  ;;  %1444 = vrcp.f32 %v488_v63 }
  0xb9   : > { %v1421_v10 = vpop.eup %1420  ;;  %v667_v21 = vmul.f32 %v1419_v35, %v219_v19  ;;  %1446 = vrcp.f32 %v489_v62 }
  0xba   : > { %v1423_v6 = vpop.eup %1422  ;;  %v668_v50 = vmul.f32 %v1421_v10, %v220_v60 }
  0xbb   : > { %v1425_v34 = vpop.eup %1424  ;;  %v1132_v24 = vpack.c.bf16 %v667_v21, %v666_v20  ;;  %v669_v54 = vmul.f32 %v1423_v6, %v221_v53 }
  0xbc   : > { %v1427_v39 = vpop.eup %1426  ;;  %v670_v51 = vmul.f32 %v1425_v34, %v222_v18 }
  0xbd   : > { %v1429_v0 = vpop.eup %1428  ;;  %898 = vst [vmem:[%s1802_s17 + $0xc0] sm:$0xff] %v1132_v24  ;;  %v1133_v12 = vpack.c.bf16 %v669_v54, %v668_v50  ;;  %v671_v19 = vmul.f32 %v1427_v39, %v223_v23 }
  0xbe   : > { %v1431_v44 = vpop.eup %1430  ;;  %v672_v60 = vmul.f32 %v1429_v0, %v224_v30 }
  0xbf   : > { %v1433_v17 = vpop.eup %1432  ;;  %899 = vst [vmem:[%s1802_s17 + $0xc8] sm:$0xff] %v1133_v12  ;;  %v1134_v9 = vpack.c.bf16 %v671_v19, %v670_v51  ;;  %v673_v53 = vmul.f32 %v1431_v44, %v225_v38 }
  0xc0   : > { %v1435_v46 = vpop.eup %1434  ;;  %v674_v18 = vmul.f32 %v1433_v17, %v226_v42 }
  0xc1   : > { %v1437_v5 = vpop.eup %1436  ;;  %900 = vst [vmem:[%s1802_s17 + $0xd0] sm:$0xff] %v1134_v9  ;;  %v1135_v61 = vpack.c.bf16 %v673_v53, %v672_v60  ;;  %v675_v23 = vmul.f32 %v1435_v46, %v227_v28 }
  0xc2   : > { %v1439_v30 = vpop.eup %1438  ;;  %v676_v47 = vmul.f32 %v1437_v5, %v228_v59 }
  0xc3   : > { %v1441_v11 = vpop.eup %1440  ;;  %901 = vst [vmem:[%s1802_s17 + $0xd8] sm:$0xff] %v1135_v61  ;;  %v1136_v38 = vpack.c.bf16 %v675_v23, %v674_v18  ;;  %v677_v42 = vmul.f32 %v1439_v30, %v229_v15 }
  0xc4   : > { %v1443_v25 = vpop.eup %1442  ;;  %v678_v32 = vmul.f32 %v1441_v11, %v230_v29 }
  0xc5   : > { %v1445_v58 = vpop.eup %1444  ;;  %902 = vst [vmem:[%s1802_s17 + $0xe0] sm:$0xff] %v1136_v38  ;;  %v1137_v28 = vpack.c.bf16 %v677_v42, %v676_v47  ;;  %v679_v49 = vmul.f32 %v1443_v25, %v231_v36 }
  0xc6   : > { %v1447_v59 = vpop.eup %1446  ;;  %v680_v16 = vmul.f32 %v1445_v58, %v232_v33 }
  0xc7   : > { %903 = vst [vmem:[%s1802_s17 + $0xe8] sm:$0xff] %v1137_v28  ;;  %v1138_v15 = vpack.c.bf16 %v679_v49, %v678_v32  ;;  %v681_v29 = vmul.f32 %v1447_v59, %v233_v27 }
  0xc9   : > { %904 = vst [vmem:[%s1802_s17 + $0xf0] sm:$0xff] %v1138_v15  ;;  %v1139_v13 = vpack.c.bf16 %v681_v29, %v680_v16 }
  0xcb   : > { %905 = vst [vmem:[%s1802_s17 + $0xf8] sm:$0xff] %v1139_v13 }
  0xcc   : > { %1489 = shalt.err (!%p1486_p10)
}
  0xcd   : > { %s1490_s13 = scalar_lea.hbm %s2122_s2, 4096  ;;  %s1494_s20 = scalar_lea.hbm %s2170_s1, 8192 }
  0xce   : > { %p1491_p0 = scmp.ne.s32.totalorder %s2122_s2, %s1490_s13  ;;  %p1495_p1 = scmp.lt.s32.totalorder %s2122_s2, %s2170_s1 }
  0xcf   : > { %p1496_p3 = scmp.lt.s32.totalorder %s1494_s20, %s1490_s13 }
  0xd0   : > { %p1492_p2 = pnand %p1491_p0, %p2179_p12 }
  0xd1   : > { %p1497_p6 = por %p1496_p3, %p1495_p1 }
  0xd2   : > { %p1493_p9 = pneg %p1492_p2 }
  0xd4   : > { %p1498_p11 = pnand %p1497_p6, %p1493_p9 }
  0xd6   : > { %1501 = shalt.err (!%p1498_p11)
}
  0xd7   : > { %s1546_s24 = smov 1024   ;;  %s1547_s26 = smov 64  }
  0xd8   : > { %1144 = dma.vmem_to_hbm [thread:$0]  (%p2179_p12), %s2125_s27, 4096, %s2122_s2, %s907_s10, %s1546_s24, %s1546_s24, %s1547_s26  }
  0xd9 PF: > { %s936_s30 = sand.u32 1, %s1528_s6   ;;  %p2180_p13 = scmp.ne.s32.totalorder %s2176_s19, 0 }
  0xda   : > { %p2181_p4 = scmp.ge.s32.totalorder %s1540_s9, 2  ;;  %s937_s17 = scalar_lea.sflag [#allocation4], %s936_s30 }
  0xdc   : > { %p1151_p5 = pnand %p2181_p4, %p2180_p13 }
  0xde   : > { %p1152_p7 = pneg %p1151_p5 }
  0xe0   : > { %1523 = dma.done.wait (%p1152_p7), %s937_s17, 4096  }
  0xe1   : > { %1525 = vsyncadd (%p1152_p7), %s937_s17, 4294963200  ;;  %p14_p8 = scmp.ge.s32.totalorder %s1583_s12, 4   ;;  %s2182_s6 = smov %s1532_s7 }
  0xe2   : > { %s2183_s7 = smov %s1536_s8  ;;  %s2184_s8 = smov %s1595_s15 }
  0xe3   : > { %s2185_s9 = smov %s1583_s12  ;;  %16 = sbr.rel (!%p14_p8) target bundleno = 5 (0x5), region = 69 }
  0xe8   :  { %942 = vsyncpa [#allocation3], 1 }
  0xe9   :  { %944 = vsyncpa [#allocation3 + $0x1], 1 }
  0xea   :  { %945 = vsyncpa [#allocation4], 1 }
  0xeb   :  { %947 = vsyncpa [#allocation4 + $0x1], 1 }

</bundles_post_ra>
